<compile_context>
chip_gen: v7x
topology: tpu7x:2x2x1
jax: 0.10.0
libtpu: 0.0.40
codegen_flags: <defaults>
</compile_context>

<pallas_src>
import functools
import math

import jax
import jax.numpy as jnp
import numpy as np
from jax.experimental import pallas as pl
from jax.experimental.pallas import tpu as pltpu


def _round_up(x: int, m: int) -> int:
    return ((x + m - 1) // m) * m


# ----------------------------- tiled matmul -------------------------------- #

def _matmul_kernel(x_ref, w_ref, o_ref, acc_ref):
    # grid = (M/tm, N/tn, K/tk); K (reduction) is innermost.
    @pl.when(pl.program_id(2) == 0)
    def _init():
        acc_ref[...] = jnp.zeros(acc_ref.shape, acc_ref.dtype)

    acc_ref[...] += jnp.dot(x_ref[...], w_ref[...],
                            preferred_element_type=jnp.float32)

    @pl.when(pl.program_id(2) == pl.num_programs(2) - 1)
    def _flush():
        o_ref[...] = acc_ref[...].astype(o_ref.dtype)


def linear(x2d: jax.Array, w: jax.Array, *, tm: int = 256, tn: int = 256,
           tk: int = 512, out_dtype=None) -> jax.Array:
    """x2d: [M, K]; w: [K, N] -> [M, N]  (== PyTorch nn.Linear with weight w.T).

    Tiles are full-extent when a dim fits in one tile, otherwise the dim is zero-padded
    up to a tile multiple (exact along K; padded M/N rows are sliced off) -- no silent
    full-extent blow-up for awkward shapes.
    """
    M, K = x2d.shape
    K2, N = w.shape
    assert K == K2
    out_dtype = out_dtype or x2d.dtype

    tm = M if M <= tm else tm          # 256/512-class tiles keep the 256x256 MXU full
    tn = N if N <= tn else tn
    tk = K if K <= tk else tk
    Mp, Np, Kp = _round_up(M, tm), _round_up(N, tn), _round_up(K, tk)
    if (Mp, Kp) != (M, K):
        x2d = jnp.pad(x2d, ((0, Mp - M), (0, Kp - K)))
    if (Kp, Np) != (K, N):
        w = jnp.pad(w, ((0, Kp - K), (0, Np - N)))

    out = pl.pallas_call(
        _matmul_kernel,
        out_shape=jax.ShapeDtypeStruct((Mp, Np), out_dtype),
        grid_spec=pltpu.PrefetchScalarGridSpec(
            num_scalar_prefetch=0,
            grid=(Mp // tm, Np // tn, Kp // tk),
            in_specs=[
                pl.BlockSpec((tm, tk), lambda i, j, k: (i, k)),
                pl.BlockSpec((tk, tn), lambda i, j, k: (k, j)),
            ],
            out_specs=pl.BlockSpec((tm, tn), lambda i, j, k: (i, j)),
            scratch_shapes=[pltpu.VMEM((tm, tn), jnp.float32)],
        ),
        compiler_params=pltpu.CompilerParams(
            dimension_semantics=("parallel", "parallel", "arbitrary"),
            vmem_limit_bytes=48 * 1024 * 1024,
        ),
    )(x2d, w)
    if (Mp, Np) != (M, N):
        out = out[:M, :N]
    return out


# ----------------------- flash attention (GQA packed) ----------------------- #

def _flash_attention_kernel(q_ref, k_ref, v_ref, o_ref, m_ref, l_ref, acc_ref,
                            *, kv_len, bkv, mask_kv):
    # q_ref: (bq, D) rows of one KV group (all n_rep query heads packed along rows,
    #         already scaled by 1/sqrt(D)).  k_ref/v_ref: (bkv, D).  o_ref: (bq, D).
    ki = pl.program_id(3)

    @pl.when(ki == 0)
    def _init():
        m_ref[...] = jnp.full(m_ref.shape, -jnp.inf, dtype=m_ref.dtype)
        l_ref[...] = jnp.zeros(l_ref.shape, l_ref.dtype)
        acc_ref[...] = jnp.zeros(acc_ref.shape, acc_ref.dtype)

    q = q_ref[...]
    k = k_ref[...]
    v = v_ref[...]

    # scores = q @ k^T (direct contraction, no materialized transpose), f32.
    s = jax.lax.dot_general(q, k, (((1,), (1,)), ((), ())),
                            preferred_element_type=jnp.float32)        # (bq, bkv)
    if mask_kv:
        col = jax.lax.broadcasted_iota(jnp.int32, s.shape, 1) + ki * bkv
        s = jnp.where(col < kv_len, s, -1e30)

    m_prev = m_ref[...]
    m_new = jnp.maximum(m_prev, jnp.max(s, axis=-1, keepdims=True))
    alpha = jnp.exp(m_prev - m_new)
    p = jnp.exp(s - m_new)

    l_ref[...] = alpha * l_ref[...] + jnp.sum(p, axis=-1, keepdims=True)
    acc_ref[...] = alpha * acc_ref[...] + jnp.dot(
        p.astype(v.dtype), v, preferred_element_type=jnp.float32)
    m_ref[...] = m_new

    @pl.when(ki == pl.num_programs(3) - 1)
    def _finalize():
        inv_l = pl.reciprocal(l_ref[...], approx=True)
        o_ref[...] = (acc_ref[...] * inv_l).astype(o_ref.dtype)


def flash_attention(q: jax.Array, k_cache: jax.Array, v_cache: jax.Array, *,
                    kv_len: int, block_q: int = 256, block_kv: int = 512) -> jax.Array:
    """q: [B, Hkv, Lq, D] (the n_rep query heads of each KV group packed along rows,
    pre-scaled by 1/sqrt(D)); k_cache/v_cache: [maxB, Hkv, T_cap, D] head-major cache;
    kv_len = valid cache length.  Returns [B, Hkv, Lq, D].

    The KV/T axis is tiled (blocks always inside the real cache capacity) and reduced
    online; ragged kv_len is handled by -inf column masking.  No causal mask (the
    reference module applies none).
    """
    B, Hkv, Lq, D = q.shape
    maxB, Hkv2, T_cap, D2 = k_cache.shape
    assert Hkv == Hkv2 and D == D2 and B <= maxB and kv_len <= T_cap
    assert T_cap % 8 == 0, "KV-cache capacity must be a multiple of 8"

    # q tiling: full extent when small, otherwise pad the packed-row axis to the tile.
    if Lq <= block_q:
        bq, Lq_p = Lq, Lq
    else:
        bq = block_q
        Lq_p = _round_up(Lq, bq)
        if Lq_p != Lq:
            q = jnp.pad(q, ((0, 0), (0, 0), (0, Lq_p - Lq), (0, 0)))

    # KV block: largest multiple of 8 <= block_kv that divides the cache capacity, so
    # every KV block reads real cache memory (never Pallas edge padding).
    bkv = min(block_kv, T_cap)
    bkv -= bkv % 8
    while T_cap % bkv != 0:
        bkv -= 8
    n_kv = pl.cdiv(kv_len, bkv)
    mask_kv = (kv_len % bkv) != 0

    kernel = functools.partial(_flash_attention_kernel,
                               kv_len=kv_len, bkv=bkv, mask_kv=mask_kv)
    out = pl.pallas_call(
        kernel,
        out_shape=jax.ShapeDtypeStruct((B, Hkv, Lq_p, D), q.dtype),
        grid_spec=pltpu.PrefetchScalarGridSpec(
            num_scalar_prefetch=0,
            grid=(B, Hkv, Lq_p // bq, n_kv),
            in_specs=[
                pl.BlockSpec((pl.Squeezed(), pl.Squeezed(), bq, D),
                             lambda b, g, qi, ki: (b, g, qi, 0)),
                pl.BlockSpec((pl.Squeezed(), pl.Squeezed(), bkv, D),
                             lambda b, g, qi, ki: (b, g, ki, 0)),
                pl.BlockSpec((pl.Squeezed(), pl.Squeezed(), bkv, D),
                             lambda b, g, qi, ki: (b, g, ki, 0)),
            ],
            out_specs=pl.BlockSpec((pl.Squeezed(), pl.Squeezed(), bq, D),
                                   lambda b, g, qi, ki: (b, g, qi, 0)),
            scratch_shapes=[
                pltpu.VMEM((bq, 1), jnp.float32),   # running max m
                pltpu.VMEM((bq, 1), jnp.float32),   # running denom l
                pltpu.VMEM((bq, D), jnp.float32),   # output accumulator
            ],
        ),
        compiler_params=pltpu.CompilerParams(
            dimension_semantics=("parallel", "parallel", "parallel", "arbitrary"),
            vmem_limit_bytes=48 * 1024 * 1024,      # fits v7x's 64 MiB with headroom
        ),
    )(q, k_cache, v_cache)
    if Lq_p != Lq:
        out = out[:, :, :Lq, :]
    return out


# ------------------------------ RoPE helpers -------------------------------- #

def make_rope_tables(head_dim: int, start_pos: int, seq_len: int,
                     theta: float = 10000.0):
    freqs = 1.0 / (theta ** (jnp.arange(0, head_dim, 2, dtype=jnp.float32) / head_dim))
    positions = jnp.arange(start_pos, start_pos + seq_len, dtype=jnp.float32)
    angles = jnp.outer(positions, freqs)                 # (S, D//2)
    return jnp.cos(angles), jnp.sin(angles)


def _permute_rope_half(w: jax.Array, n_heads: int, head_dim: int) -> jax.Array:
    """Reorder each head's output columns from interleaved (x0,y0,x1,y1,...) to
    half-split (x0..x_{d/2-1}, y0..y_{d/2-1}) so RoPE becomes rotate-half on
    contiguous lanes.  q.k^T is invariant because q and k get the same permutation."""
    in_dim = w.shape[0]
    w4 = w.reshape(in_dim, n_heads, head_dim // 2, 2)
    return jnp.transpose(w4, (0, 1, 3, 2)).reshape(in_dim, n_heads * head_dim)


def prepare_weights(wq, wk, wv, wo, *, n_heads_q, n_kv_heads, head_dim,
                    dtype=jnp.bfloat16):
    """One-time weight prep: permute wq/wk columns for rotate-half RoPE, fuse QKV,
    cast to the bf16 compute dtype."""
    wq_p = _permute_rope_half(wq, n_heads_q, head_dim)
    wk_p = _permute_rope_half(wk, n_kv_heads, head_dim)
    wqkv = jnp.concatenate([wq_p, wk_p, wv], axis=1).astype(dtype)
    return wqkv, wo.astype(dtype)


def _apply_rope_half(x: jax.Array, cos: jax.Array, sin: jax.Array,
                     scale: float = 1.0) -> jax.Array:
    """Rotate-half RoPE on the permuted (x-half | y-half) layout.
    x: [B, S, H, D]; cos/sin: [S, D//2].  `scale` folds e.g. 1/sqrt(D) into q for free."""
    # TODO(synk): fuse this (and the pack-to-[B,Hkv,n_rep*S,D] layout) into the fused
    # QKV projection kernel epilogue to remove one more HBM round trip of q/k.
    d2 = x.shape[-1] // 2
    x1 = x[..., :d2].astype(jnp.float32)
    x2 = x[..., d2:].astype(jnp.float32)
    c = (cos * scale)[None, :, None, :].astype(jnp.float32)
    s = (sin * scale)[None, :, None, :].astype(jnp.float32)
    out = jnp.concatenate([x1 * c - x2 * s, x1 * s + x2 * c], axis=-1)
    return out.astype(x.dtype)


def _apply_rope_interleaved(x: jax.Array, cos: jax.Array, sin: jax.Array) -> jax.Array:
    """Reference-only interleaved RoPE (matches torch.view_as_complex formulation)."""
    xf = x.astype(jnp.float32)
    x_even = xf[..., 0::2]
    x_odd = xf[..., 1::2]
    c = cos[None, :, None, :].astype(jnp.float32)
    s = sin[None, :, None, :].astype(jnp.float32)
    out = jnp.stack([x_even * c - x_odd * s, x_even * s + x_odd * c], axis=-1)
    return out.reshape(x.shape).astype(x.dtype)


# ------------------------------ forward pass -------------------------------- #

@functools.partial(
    jax.jit,
    static_argnames=("start_pos", "n_heads_q", "n_kv_heads", "compute_dtype"),
    donate_argnames=("cache_k", "cache_v"),              # in-place KV-cache update
)
def self_attention_forward(x, rope_cos, rope_sin, wqkv, wo, cache_k, cache_v, *,
                           start_pos, n_heads_q, n_kv_heads,
                           compute_dtype=jnp.bfloat16):
    """Forward pass.  Weights come from prepare_weights (rotate-half column order, bf16).
    cache_k/cache_v are head-major [maxB, Hkv, T_cap, D] and returned updated."""
    B, S, dim = x.shape
    D = dim // n_heads_q
    n_rep = n_heads_q // n_kv_heads
    q_width = n_heads_q * D
    kv_width = n_kv_heads * D
    cdt = compute_dtype if compute_dtype is not None else x.dtype

    # ---- fused QKV projection: one read of x, one pipelined bf16 matmul ----
    x2d = x.reshape(B * S, dim).astype(cdt)
    qkv = linear(x2d, wqkv.astype(cdt), out_dtype=cdt)    # [B*S, (Hq + 2*Hkv) * D]
    xq = qkv[:, :q_width].reshape(B, S, n_heads_q, D)
    xk = qkv[:, q_width:q_width + kv_width].reshape(B, S, n_kv_heads, D)
    xv = qkv[:, q_width + kv_width:].reshape(B, S, n_kv_heads, D)

    # ---- rotate-half RoPE (contiguous halves); 1/sqrt(D) folded into q ----
    sm_scale = 1.0 / math.sqrt(D)
    xq = _apply_rope_half(xq, rope_cos, rope_sin, scale=sm_scale)
    xk = _apply_rope_half(xk, rope_cos, rope_sin)

    # ---- head-major KV cache update (in place via donation) ----
    xk_hm = jnp.transpose(xk, (0, 2, 1, 3)).astype(cache_k.dtype)   # [B, Hkv, S, D]
    xv_hm = jnp.transpose(xv, (0, 2, 1, 3)).astype(cache_v.dtype)
    cache_k = jax.lax.dynamic_update_slice(cache_k, xk_hm, (0, 0, start_pos, 0))
    cache_v = jax.lax.dynamic_update_slice(cache_v, xv_hm, (0, 0, start_pos, 0))
    T = start_pos + S

    # ---- GQA packing: all n_rep query heads of a KV group share one q-row block ----
    q_packed = jnp.transpose(xq, (0, 2, 1, 3)).reshape(B, n_kv_heads, n_rep * S, D)
    q_packed = q_packed.astype(cache_k.dtype)

    # ---- flash attention reading K/V straight from the head-major cache ----
    attn = flash_attention(q_packed, cache_k, cache_v, kv_len=T)    # [B, Hkv, n_rep*S, D]
    attn = attn.reshape(B, n_heads_q, S, D)
    attn = jnp.transpose(attn, (0, 2, 1, 3)).reshape(B * S, q_width)

    # ---- output projection ----
    out = linear(attn.astype(cdt), wo.astype(cdt), out_dtype=x.dtype)
    return out.reshape(B, S, dim), cache_k, cache_v


# --------------------------- pure-JAX reference ----------------------------- #

def _reference_forward(x, rope_cos, rope_sin, wq, wk, wv, wo,
                       cache_k, cache_v, start_pos, n_heads_q, n_kv_heads):
    """f32 reference with the original (interleaved RoPE, [B,T,H,D]-cache) formulation."""
    B, S, dim = x.shape
    D = dim // n_heads_q
    n_rep = n_heads_q // n_kv_heads
    x2d = x.reshape(B * S, dim)
    xq = (x2d @ wq).reshape(B, S, n_heads_q, D)
    xk = (x2d @ wk).reshape(B, S, n_kv_heads, D)
    xv = (x2d @ wv).reshape(B, S, n_kv_heads, D)
    xq = _apply_rope_interleaved(xq, rope_cos, rope_sin)
    xk = _apply_rope_interleaved(xk, rope_cos, rope_sin)
    ck = jax.lax.dynamic_update_slice(cache_k, xk, (0, start_pos, 0, 0))
    cv = jax.lax.dynamic_update_slice(cache_v, xv, (0, start_pos, 0, 0))
    T = start_pos + S
    keys = jnp.repeat(ck[:B, :T], n_rep, axis=2)
    values = jnp.repeat(cv[:B, :T], n_rep, axis=2)
    q = jnp.transpose(xq, (0, 2, 1, 3))
    k = jnp.transpose(keys, (0, 2, 1, 3))
    v = jnp.transpose(values, (0, 2, 1, 3))
    scores = jnp.einsum("bhsd,bhtd->bhst", q, k) / math.sqrt(D)
    p = jax.nn.softmax(scores.astype(jnp.float32), axis=-1).astype(q.dtype)
    o = jnp.einsum("bhst,bhtd->bhsd", p, v)
    o = jnp.transpose(o, (0, 2, 1, 3)).reshape(B * S, n_heads_q * D)
    return (o @ wo).reshape(B, S, dim), ck, cv


# --------------------------------- main ------------------------------------ #

if __name__ == "__main__":
    # Small, forward-consistent shapes.
    B, S, dim = 2, 8, 32
    n_heads, n_kv_heads = 4, 2
    head_dim = dim // n_heads                 # 8
    max_batch_size, max_seq_len = 4, 16

    key = jax.random.PRNGKey(0)
    kx, kq, kk, kv, ko, kx2 = jax.random.split(key, 6)
    x = jax.random.normal(kx, (B, S, dim), dtype=jnp.float32)
    # Weights stored as [in_dim, out_dim] (== PyTorch weight.T).
    wq = jax.random.normal(kq, (dim, n_heads * head_dim), dtype=jnp.float32) * 0.05
    wk = jax.random.normal(kk, (dim, n_kv_heads * head_dim), dtype=jnp.float32) * 0.05
    wv = jax.random.normal(kv, (dim, n_kv_heads * head_dim), dtype=jnp.float32) * 0.05
    wo = jax.random.normal(ko, (n_heads * head_dim, dim), dtype=jnp.float32) * 0.05

    # One-time weight prep: fused QKV with RoPE-half column order, bf16.
    wqkv_b, wo_b = prepare_weights(wq, wk, wv, wo, n_heads_q=n_heads,
                                   n_kv_heads=n_kv_heads, head_dim=head_dim)

    # Kernel-path KV cache: head-major, bf16 (cast once, never per step).
    cache_k = jnp.zeros((max_batch_size, n_kv_heads, max_seq_len, head_dim), jnp.bfloat16)
    cache_v = jnp.zeros_like(cache_k)
    # Reference cache: original [B, T, Hkv, D] f32 layout.
    ref_ck = jnp.zeros((max_batch_size, max_seq_len, n_kv_heads, head_dim), jnp.float32)
    ref_cv = jnp.zeros_like(ref_ck)

    # ---- step 1: prefill (start_pos = 0, S = 8) ----
    start_pos = 0
    cos1, sin1 = make_rope_tables(head_dim, start_pos, S)
    ref1, ref_ck, ref_cv = _reference_forward(x, cos1, sin1, wq, wk, wv, wo,
                                              ref_ck, ref_cv, start_pos,
                                              n_heads, n_kv_heads)
    ref1 = jax.block_until_ready(ref1)

    out1, cache_k, cache_v = self_attention_forward(
        x, cos1, sin1, wqkv_b, wo_b, cache_k, cache_v,
        start_pos=start_pos, n_heads_q=n_heads, n_kv_heads=n_kv_heads)
    out1 = jax.block_until_ready(out1)
    assert out1.shape == (B, S, dim)
    np.testing.assert_allclose(np.asarray(out1), np.asarray(ref1), rtol=5e-2, atol=2e-2)

    # ---- step 2: decode (start_pos = 8, S = 1) — exercises ragged KV masking + cache ----
    start_pos2, S2 = S, 1
    x2 = jax.random.normal(kx2, (B, S2, dim), dtype=jnp.float32)
    cos2, sin2 = make_rope_tables(head_dim, start_pos2, S2)
    ref2, ref_ck, ref_cv = _reference_forward(x2, cos2, sin2, wq, wk, wv, wo,
                                              ref_ck, ref_cv, start_pos2,
                                              n_heads, n_kv_heads)
    ref2 = jax.block_until_ready(ref2)

    out2, cache_k, cache_v = self_attention_forward(
        x2, cos2, sin2, wqkv_b, wo_b, cache_k, cache_v,
        start_pos=start_pos2, n_heads_q=n_heads, n_kv_heads=n_kv_heads)
    out2 = jax.block_until_ready(out2)
    assert out2.shape == (B, S2, dim)
    np.testing.assert_allclose(np.asarray(out2), np.asarray(ref2), rtol=5e-2, atol=2e-2)

    print("KERNEL_OK")
</pallas_src>

<mosaic_0001>
module attributes {stable_mosaic.version = 11 : i64} {
  func.func @_matmul_kernel(%arg0: i32, %arg1: i32, %arg2: i32, %arg3: memref<16x32xbf16, #tpu.memory_space<vmem>>, %arg4: memref<32x64xbf16, #tpu.memory_space<vmem>>, %arg5: memref<16x64xbf16, #tpu.memory_space<vmem>>, %arg6: memref<16x64xf32, #tpu.memory_space<vmem>>) attributes {dimension_semantics = [#tpu.dimension_semantics<parallel>, #tpu.dimension_semantics<parallel>, #tpu.dimension_semantics<arbitrary>], iteration_bounds = array<i64: 1, 1, 1>, scalar_prefetch = 0 : i64, scratch_operands = 1 : i64, tpu.core_type = #tpu.core_type<tc>, window_params = [{transform_indices = @transform_0, window_bounds = array<i64: 16, 32>}, {transform_indices = @transform_1, window_bounds = array<i64: 32, 64>}, {transform_indices = @transform_2, window_bounds = array<i64: 16, 64>}]} {
    %c0_i32 = arith.constant 0 : i32
    %0 = arith.cmpi eq, %arg2, %c0_i32 : i32
    %1 = arith.extui %0 : i1 to i32
    %c0_i32_0 = arith.constant 0 : i32
    %2 = arith.cmpi ne, %1, %c0_i32_0 : i32
    scf.if %2 {
      %cst_10 = arith.constant 0.000000e+00 : f32
      %12 = vector.broadcast %cst_10 : f32 to vector<16x64xf32>
      %c0_11 = arith.constant 0 : index
      %c0_12 = arith.constant 0 : index
      %13 = vector.load %arg6[%c0_11, %c0_12] : memref<16x64xf32, #tpu.memory_space<vmem>>, vector<16x64xf32>
      tpu.vector_store %arg6[%c0_11, %c0_12], %12 {strides = array<i32>} : memref<16x64xf32, #tpu.memory_space<vmem>>, vector<16x64xf32>,
    } else {
    }
    %c0 = arith.constant 0 : index
    %c0_1 = arith.constant 0 : index
    %3 = vector.load %arg6[%c0, %c0_1] : memref<16x64xf32, #tpu.memory_space<vmem>>, vector<16x64xf32>
    %c0_2 = arith.constant 0 : index
    %c0_3 = arith.constant 0 : index
    %4 = vector.load %arg3[%c0_2, %c0_3] : memref<16x32xbf16, #tpu.memory_space<vmem>>, vector<16x32xbf16>
    %c0_4 = arith.constant 0 : index
    %c0_5 = arith.constant 0 : index
    %5 = vector.load %arg4[%c0_4, %c0_5] : memref<32x64xbf16, #tpu.memory_space<vmem>>, vector<32x64xbf16>
    %cst = arith.constant dense<0.000000e+00> : vector<16x64xf32>
    %6 = tpu.matmul %4, %5, %cst {dimension_numbers = #tpu.dot_dimension_numbers<[1], [0], [0], [1], [0, 0, 1, 1], [], []>} : vector<16x32xbf16>, vector<32x64xbf16>, vector<16x64xf32> -> vector<16x64xf32>
    %7 = arith.addf %3, %6 : vector<16x64xf32>
    %c0_6 = arith.constant 0 : index
    %c0_7 = arith.constant 0 : index
    %8 = vector.load %arg6[%c0_6, %c0_7] : memref<16x64xf32, #tpu.memory_space<vmem>>, vector<16x64xf32>
    tpu.vector_store %arg6[%c0_6, %c0_7], %7 {strides = array<i32>} : memref<16x64xf32, #tpu.memory_space<vmem>>, vector<16x64xf32>,
    %c0_i32_8 = arith.constant 0 : i32
    %9 = arith.cmpi eq, %arg2, %c0_i32_8 : i32
    %10 = arith.extui %9 : i1 to i32
    %c0_i32_9 = arith.constant 0 : i32
    %11 = arith.cmpi ne, %10, %c0_i32_9 : i32
    scf.if %11 {
      %c0_10 = arith.constant 0 : index
      %c0_11 = arith.constant 0 : index
      %12 = vector.load %arg6[%c0_10, %c0_11] : memref<16x64xf32, #tpu.memory_space<vmem>>, vector<16x64xf32>
      %13 = arith.truncf %12 : vector<16x64xf32> to vector<16x64xbf16>
      %c0_12 = arith.constant 0 : index
      %c0_13 = arith.constant 0 : index
      %14 = vector.load %arg5[%c0_12, %c0_13] : memref<16x64xbf16, #tpu.memory_space<vmem>>, vector<16x64xbf16>
      tpu.vector_store %arg5[%c0_12, %c0_13], %13 {strides = array<i32>} : memref<16x64xbf16, #tpu.memory_space<vmem>>, vector<16x64xbf16>,
    } else {
    }
    return
  }
  func.func @transform_0(%arg0: i32, %arg1: i32, %arg2: i32) -> (i32, i32) {
    %c0_i32 = arith.constant 0 : i32
    return %arg0, %arg2 : i32, i32
  }
  func.func @transform_1(%arg0: i32, %arg1: i32, %arg2: i32) -> (i32, i32) {
    %c0_i32 = arith.constant 0 : i32
    return %arg2, %arg1 : i32, i32
  }
  func.func @transform_2(%arg0: i32, %arg1: i32, %arg2: i32) -> (i32, i32) {
    %c0_i32 = arith.constant 0 : i32
    return %arg0, %arg1 : i32, i32
  }
}

module attributes {stable_mosaic.version = 11 : i64} {
  func.func @_flash_attention_kernel(%arg0: i32, %arg1: i32, %arg2: i32, %arg3: i32, %arg4: memref<1x1x16x8xbf16, #tpu.memory_space<vmem>>, %arg5: memref<1x1x16x8xbf16, #tpu.memory_space<vmem>>, %arg6: memref<1x1x16x8xbf16, #tpu.memory_space<vmem>>, %arg7: memref<1x1x16x8xbf16, #tpu.memory_space<vmem>>, %arg8: memref<16x1xf32, #tpu.memory_space<vmem>>, %arg9: memref<16x1xf32, #tpu.memory_space<vmem>>, %arg10: memref<16x8xf32, #tpu.memory_space<vmem>>) attributes {dimension_semantics = [#tpu.dimension_semantics<parallel>, #tpu.dimension_semantics<parallel>, #tpu.dimension_semantics<parallel>, #tpu.dimension_semantics<arbitrary>], iteration_bounds = array<i64: 2, 2, 1, 1>, scalar_prefetch = 0 : i64, scratch_operands = 3 : i64, tpu.core_type = #tpu.core_type<tc>, window_params = [{transform_indices = @transform_0, window_bounds = array<i64: 1, 1, 16, 8>}, {transform_indices = @transform_1, window_bounds = array<i64: 1, 1, 16, 8>}, {transform_indices = @transform_2, window_bounds = array<i64: 1, 1, 16, 8>}, {transform_indices = @transform_3, window_bounds = array<i64: 1, 1, 16, 8>}]} {
    %c0_i32 = arith.constant 0 : i32
    %0 = arith.cmpi eq, %arg3, %c0_i32 : i32
    %1 = arith.extui %0 : i1 to i32
    %c0_i32_0 = arith.constant 0 : i32
    %2 = arith.cmpi ne, %1, %c0_i32_0 : i32
    scf.if %2 {
      %cst_30 = arith.constant 0xFF800000 : f32
      %44 = vector.broadcast %cst_30 : f32 to vector<16x1xf32>
      %c0_31 = arith.constant 0 : index
      %c0_32 = arith.constant 0 : index
      %45 = vector.load %arg8[%c0_31, %c0_32] : memref<16x1xf32, #tpu.memory_space<vmem>>, vector<16x1xf32>
      tpu.vector_store %arg8[%c0_31, %c0_32], %44 {strides = array<i32>} : memref<16x1xf32, #tpu.memory_space<vmem>>, vector<16x1xf32>,
      %cst_33 = arith.constant 0.000000e+00 : f32
      %46 = vector.broadcast %cst_33 : f32 to vector<16x1xf32>
      %c0_34 = arith.constant 0 : index
      %c0_35 = arith.constant 0 : index
      %47 = vector.load %arg9[%c0_34, %c0_35] : memref<16x1xf32, #tpu.memory_space<vmem>>, vector<16x1xf32>
      tpu.vector_store %arg9[%c0_34, %c0_35], %46 {strides = array<i32>} : memref<16x1xf32, #tpu.memory_space<vmem>>, vector<16x1xf32>,
      %cst_36 = arith.constant 0.000000e+00 : f32
      %48 = vector.broadcast %cst_36 : f32 to vector<16x8xf32>
      %c0_37 = arith.constant 0 : index
      %c0_38 = arith.constant 0 : index
      %49 = vector.load %arg10[%c0_37, %c0_38] : memref<16x8xf32, #tpu.memory_space<vmem>>, vector<16x8xf32>
      tpu.vector_store %arg10[%c0_37, %c0_38], %48 {strides = array<i32>} : memref<16x8xf32, #tpu.memory_space<vmem>>, vector<16x8xf32>,
    } else {
    }
    %c0 = arith.constant 0 : index
    %c0_1 = arith.constant 0 : index
    %c0_2 = arith.constant 0 : index
    %c0_3 = arith.constant 0 : index
    %3 = vector.load %arg4[%c0, %c0_1, %c0_2, %c0_3] : memref<1x1x16x8xbf16, #tpu.memory_space<vmem>>, vector<1x1x16x8xbf16>
    %4 = vector.shape_cast %3 : vector<1x1x16x8xbf16> to vector<16x8xbf16>
    %c0_4 = arith.constant 0 : index
    %c0_5 = arith.constant 0 : index
    %c0_6 = arith.constant 0 : index
    %c0_7 = arith.constant 0 : index
    %5 = vector.load %arg5[%c0_4, %c0_5, %c0_6, %c0_7] : memref<1x1x16x8xbf16, #tpu.memory_space<vmem>>, vector<1x1x16x8xbf16>
    %6 = vector.shape_cast %5 : vector<1x1x16x8xbf16> to vector<16x8xbf16>
    %c0_8 = arith.constant 0 : index
    %c0_9 = arith.constant 0 : index
    %c0_10 = arith.constant 0 : index
    %c0_11 = arith.constant 0 : index
    %7 = vector.load %arg6[%c0_8, %c0_9, %c0_10, %c0_11] : memref<1x1x16x8xbf16, #tpu.memory_space<vmem>>, vector<1x1x16x8xbf16>
    %8 = vector.shape_cast %7 : vector<1x1x16x8xbf16> to vector<16x8xbf16>
    %cst = arith.constant dense<0.000000e+00> : vector<16x16xf32>
    %9 = tpu.matmul %4, %6, %cst {dimension_numbers = #tpu.dot_dimension_numbers<[1], [1], [0], [0], [0, 0, 1, 0], [], []>} : vector<16x8xbf16>, vector<16x8xbf16>, vector<16x16xf32> -> vector<16x16xf32>
    %10 = tpu.iota {dimensions = array<i32: 1>} : vector<16x16xi32>
    %c16_i32 = arith.constant 16 : i32
    %11 = arith.muli %arg3, %c16_i32 : i32
    %12 = vector.broadcast %11 : i32 to vector<16x16xi32>
    %13 = arith.addi %10, %12 : vector<16x16xi32>
    %c8_i32 = arith.constant 8 : i32
    %14 = vector.broadcast %c8_i32 : i32 to vector<16x16xi32>
    %15 = arith.cmpi slt, %13, %14 : vector<16x16xi32>
    %cst_12 = arith.constant -1.000000e+30 : f32
    %16 = vector.broadcast %cst_12 : f32 to vector<16x16xf32>
    %17 = arith.select %15, %9, %16 : vector<16x16xi1>, vector<16x16xf32>
    %c0_13 = arith.constant 0 : index
    %c0_14 = arith.constant 0 : index
    %18 = vector.load %arg8[%c0_13, %c0_14] : memref<16x1xf32, #tpu.memory_space<vmem>>, vector<16x1xf32>
    %cst_15 = arith.constant dense<0xFF800000> : vector<16xf32>
    %19 = vector.multi_reduction <maximumf>, %17, %cst_15 [1] : vector<16x16xf32> to vector<16xf32>
    %20 = vector.shape_cast %19 : vector<16xf32> to vector<16x1xf32>
    %21 = arith.maximumf %18, %20 : vector<16x1xf32>
    %22 = arith.subf %18, %21 : vector<16x1xf32>
    %23 = math.exp %22 : vector<16x1xf32>
    %24 = vector.broadcast %21 : vector<16x1xf32> to vector<16x16xf32>
    %25 = arith.subf %17, %24 : vector<16x16xf32>
    %26 = math.exp %25 : vector<16x16xf32>
    %c0_16 = arith.constant 0 : index
    %c0_17 = arith.constant 0 : index
    %27 = vector.load %arg9[%c0_16, %c0_17] : memref<16x1xf32, #tpu.memory_space<vmem>>, vector<16x1xf32>
    %28 = arith.mulf %23, %27 : vector<16x1xf32>
    %cst_18 = arith.constant dense<0.000000e+00> : vector<16xf32>
    %29 = vector.multi_reduction <add>, %26, %cst_18 [1] : vector<16x16xf32> to vector<16xf32>
    %30 = vector.shape_cast %29 : vector<16xf32> to vector<16x1xf32>
    %31 = arith.addf %28, %30 : vector<16x1xf32>
    %c0_19 = arith.constant 0 : index
    %c0_20 = arith.constant 0 : index
    %32 = vector.load %arg9[%c0_19, %c0_20] : memref<16x1xf32, #tpu.memory_space<vmem>>, vector<16x1xf32>
    tpu.vector_store %arg9[%c0_19, %c0_20], %31 {strides = array<i32>} : memref<16x1xf32, #tpu.memory_space<vmem>>, vector<16x1xf32>,
    %c0_21 = arith.constant 0 : index
    %c0_22 = arith.constant 0 : index
    %33 = vector.load %arg10[%c0_21, %c0_22] : memref<16x8xf32, #tpu.memory_space<vmem>>, vector<16x8xf32>
    %34 = vector.broadcast %23 : vector<16x1xf32> to vector<16x8xf32>
    %35 = arith.mulf %34, %33 : vector<16x8xf32>
    %36 = arith.truncf %26 : vector<16x16xf32> to vector<16x16xbf16>
    %cst_23 = arith.constant dense<0.000000e+00> : vector<16x8xf32>
    %37 = tpu.matmul %36, %8, %cst_23 {dimension_numbers = #tpu.dot_dimension_numbers<[1], [0], [0], [1], [0, 0, 1, 1], [], []>} : vector<16x16xbf16>, vector<16x8xbf16>, vector<16x8xf32> -> vector<16x8xf32>
    %38 = arith.addf %35, %37 : vector<16x8xf32>
    %c0_24 = arith.constant 0 : index
    %c0_25 = arith.constant 0 : index
    %39 = vector.load %arg10[%c0_24, %c0_25] : memref<16x8xf32, #tpu.memory_space<vmem>>, vector<16x8xf32>
    tpu.vector_store %arg10[%c0_24, %c0_25], %38 {strides = array<i32>} : memref<16x8xf32, #tpu.memory_space<vmem>>, vector<16x8xf32>,
    %c0_26 = arith.constant 0 : index
    %c0_27 = arith.constant 0 : index
    %40 = vector.load %arg8[%c0_26, %c0_27] : memref<16x1xf32, #tpu.memory_space<vmem>>, vector<16x1xf32>
    tpu.vector_store %arg8[%c0_26, %c0_27], %21 {strides = array<i32>} : memref<16x1xf32, #tpu.memory_space<vmem>>, vector<16x1xf32>,
    %c0_i32_28 = arith.constant 0 : i32
    %41 = arith.cmpi eq, %arg3, %c0_i32_28 : i32
    %42 = arith.extui %41 : i1 to i32
    %c0_i32_29 = arith.constant 0 : i32
    %43 = arith.cmpi ne, %42, %c0_i32_29 : i32
    scf.if %43 {
      %c0_30 = arith.constant 0 : index
      %c0_31 = arith.constant 0 : index
      %44 = vector.load %arg9[%c0_30, %c0_31] : memref<16x1xf32, #tpu.memory_space<vmem>>, vector<16x1xf32>
      %45 = tpu.reciprocal %44 {approx = true} : vector<16x1xf32> -> vector<16x1xf32>
      %c0_32 = arith.constant 0 : index
      %c0_33 = arith.constant 0 : index
      %46 = vector.load %arg10[%c0_32, %c0_33] : memref<16x8xf32, #tpu.memory_space<vmem>>, vector<16x8xf32>
      %47 = vector.broadcast %45 : vector<16x1xf32> to vector<16x8xf32>
      %48 = arith.mulf %46, %47 : vector<16x8xf32>
      %49 = arith.truncf %48 : vector<16x8xf32> to vector<16x8xbf16>
      %c0_34 = arith.constant 0 : index
      %c0_35 = arith.constant 0 : index
      %c0_36 = arith.constant 0 : index
      %c0_37 = arith.constant 0 : index
      %50 = vector.load %arg7[%c0_34, %c0_35, %c0_36, %c0_37] : memref<1x1x16x8xbf16, #tpu.memory_space<vmem>>, vector<1x1x16x8xbf16>
      %51 = vector.shape_cast %50 : vector<1x1x16x8xbf16> to vector<16x8xbf16>
      %52 = vector.shape_cast %49 : vector<16x8xbf16> to vector<1x1x16x8xbf16>
      tpu.vector_store %arg7[%c0_34, %c0_35, %c0_36, %c0_37], %52 {strides = array<i32>} : memref<1x1x16x8xbf16, #tpu.memory_space<vmem>>, vector<1x1x16x8xbf16>,
    } else {
    }
    return
  }
  func.func @transform_0(%arg0: i32, %arg1: i32, %arg2: i32, %arg3: i32) -> (i32, i32, i32, i32) {
    %c0_i32 = arith.constant 0 : i32
    %c0_i32_0 = arith.constant 0 : i32
    return %arg0, %arg1, %arg2, %c0_i32 : i32, i32, i32, i32
  }
  func.func @transform_1(%arg0: i32, %arg1: i32, %arg2: i32, %arg3: i32) -> (i32, i32, i32, i32) {
    %c0_i32 = arith.constant 0 : i32
    %c0_i32_0 = arith.constant 0 : i32
    return %arg0, %arg1, %arg3, %c0_i32 : i32, i32, i32, i32
  }
  func.func @transform_2(%arg0: i32, %arg1: i32, %arg2: i32, %arg3: i32) -> (i32, i32, i32, i32) {
    %c0_i32 = arith.constant 0 : i32
    %c0_i32_0 = arith.constant 0 : i32
    return %arg0, %arg1, %arg3, %c0_i32 : i32, i32, i32, i32
  }
  func.func @transform_3(%arg0: i32, %arg1: i32, %arg2: i32, %arg3: i32) -> (i32, i32, i32, i32) {
    %c0_i32 = arith.constant 0 : i32
    %c0_i32_0 = arith.constant 0 : i32
    return %arg0, %arg1, %arg2, %c0_i32 : i32, i32, i32, i32
  }
}

module attributes {stable_mosaic.version = 11 : i64} {
  func.func @_matmul_kernel(%arg0: i32, %arg1: i32, %arg2: i32, %arg3: memref<16x32xbf16, #tpu.memory_space<vmem>>, %arg4: memref<32x32xbf16, #tpu.memory_space<vmem>>, %arg5: memref<16x32xf32, #tpu.memory_space<vmem>>, %arg6: memref<16x32xf32, #tpu.memory_space<vmem>>) attributes {dimension_semantics = [#tpu.dimension_semantics<parallel>, #tpu.dimension_semantics<parallel>, #tpu.dimension_semantics<arbitrary>], iteration_bounds = array<i64: 1, 1, 1>, scalar_prefetch = 0 : i64, scratch_operands = 1 : i64, tpu.core_type = #tpu.core_type<tc>, window_params = [{transform_indices = @transform_0, window_bounds = array<i64: 16, 32>}, {transform_indices = @transform_1, window_bounds = array<i64: 32, 32>}, {transform_indices = @transform_2, window_bounds = array<i64: 16, 32>}]} {
    %c0_i32 = arith.constant 0 : i32
    %0 = arith.cmpi eq, %arg2, %c0_i32 : i32
    %1 = arith.extui %0 : i1 to i32
    %c0_i32_0 = arith.constant 0 : i32
    %2 = arith.cmpi ne, %1, %c0_i32_0 : i32
    scf.if %2 {
      %cst_10 = arith.constant 0.000000e+00 : f32
      %12 = vector.broadcast %cst_10 : f32 to vector<16x32xf32>
      %c0_11 = arith.constant 0 : index
      %c0_12 = arith.constant 0 : index
      %13 = vector.load %arg6[%c0_11, %c0_12] : memref<16x32xf32, #tpu.memory_space<vmem>>, vector<16x32xf32>
      tpu.vector_store %arg6[%c0_11, %c0_12], %12 {strides = array<i32>} : memref<16x32xf32, #tpu.memory_space<vmem>>, vector<16x32xf32>,
    } else {
    }
    %c0 = arith.constant 0 : index
    %c0_1 = arith.constant 0 : index
    %3 = vector.load %arg6[%c0, %c0_1] : memref<16x32xf32, #tpu.memory_space<vmem>>, vector<16x32xf32>
    %c0_2 = arith.constant 0 : index
    %c0_3 = arith.constant 0 : index
    %4 = vector.load %arg3[%c0_2, %c0_3] : memref<16x32xbf16, #tpu.memory_space<vmem>>, vector<16x32xbf16>
    %c0_4 = arith.constant 0 : index
    %c0_5 = arith.constant 0 : index
    %5 = vector.load %arg4[%c0_4, %c0_5] : memref<32x32xbf16, #tpu.memory_space<vmem>>, vector<32x32xbf16>
    %cst = arith.constant dense<0.000000e+00> : vector<16x32xf32>
    %6 = tpu.matmul %4, %5, %cst {dimension_numbers = #tpu.dot_dimension_numbers<[1], [0], [0], [1], [0, 0, 1, 1], [], []>} : vector<16x32xbf16>, vector<32x32xbf16>, vector<16x32xf32> -> vector<16x32xf32>
    %7 = arith.addf %3, %6 : vector<16x32xf32>
    %c0_6 = arith.constant 0 : index
    %c0_7 = arith.constant 0 : index
    %8 = vector.load %arg6[%c0_6, %c0_7] : memref<16x32xf32, #tpu.memory_space<vmem>>, vector<16x32xf32>
    tpu.vector_store %arg6[%c0_6, %c0_7], %7 {strides = array<i32>} : memref<16x32xf32, #tpu.memory_space<vmem>>, vector<16x32xf32>,
    %c0_i32_8 = arith.constant 0 : i32
    %9 = arith.cmpi eq, %arg2, %c0_i32_8 : i32
    %10 = arith.extui %9 : i1 to i32
    %c0_i32_9 = arith.constant 0 : i32
    %11 = arith.cmpi ne, %10, %c0_i32_9 : i32
    scf.if %11 {
      %c0_10 = arith.constant 0 : index
      %c0_11 = arith.constant 0 : index
      %12 = vector.load %arg6[%c0_10, %c0_11] : memref<16x32xf32, #tpu.memory_space<vmem>>, vector<16x32xf32>
      %c0_12 = arith.constant 0 : index
      %c0_13 = arith.constant 0 : index
      %13 = vector.load %arg5[%c0_12, %c0_13] : memref<16x32xf32, #tpu.memory_space<vmem>>, vector<16x32xf32>
      tpu.vector_store %arg5[%c0_12, %c0_13], %12 {strides = array<i32>} : memref<16x32xf32, #tpu.memory_space<vmem>>, vector<16x32xf32>,
    } else {
    }
    return
  }
  func.func @transform_0(%arg0: i32, %arg1: i32, %arg2: i32) -> (i32, i32) {
    %c0_i32 = arith.constant 0 : i32
    return %arg0, %arg2 : i32, i32
  }
  func.func @transform_1(%arg0: i32, %arg1: i32, %arg2: i32) -> (i32, i32) {
    %c0_i32 = arith.constant 0 : i32
    return %arg2, %arg1 : i32, i32
  }
  func.func @transform_2(%arg0: i32, %arg1: i32, %arg2: i32) -> (i32, i32) {
    %c0_i32 = arith.constant 0 : i32
    return %arg0, %arg1 : i32, i32
  }
}

</mosaic_0001>

<bundles_post_ra>
// kernel: self_attention_forward.3
= control target key start
LH: loop header
LB: loop body
LE: loop exit
PB: predicated region body
PF: predicated region fallthrough
CT: control target
= control target key end

     0   :  { %vm16_vm0 = vcmask 523264   ;;  %v138_v0 = vmov 0.0   ;;  %vm139_vm1 = vmmov 0   ;;  %vm44_vm2 = vcmask 261120   ;;  %s174_s1 = inlined_call_operand.vmem [shape: bf16[32,64], index: 1, kind: input, shape index: {}]   ;;  %s175_s0 = inlined_call_operand.vmem [shape: bf16[16,32], index: 0, kind: input, shape index: {}]   ;;  %s176_s2 = inlined_call_operand.vmem [shape: bf16[16,64], index: 2, kind: output, shape index: {}]  }
   0x1   :  { %125 = vmatprep.subr.bf16.mxu0 %v138_v0  ;;  %v135_v1 = vld [vmem:[%s174_s1] sm:$0xff]   ;;  %129 = vmatprep.mubr.msk.bf16.mxu0 %vm139_vm1, %v138_v0  ;;  %17 = vst.msk [vmem:[#allocation2] sm:$0xff] %vm16_vm0, %v138_v0  ;;  %18 = vst.msk [vmem:[#allocation2 + $0x8] sm:$0xff] %vm16_vm0, %v138_v0  ;;  %v136_v2 = vld [vmem:[%s174_s1 + $0x8] sm:$0xff]   ;;  %vm107_vm3 = vcmask 519168  }
   0x2   :  { %126 = vmatpush3.bf16.msra.mxu0 %v135_v1  ;;  %v137_v3 = vld [vmem:[%s175_s0] sm:$0xff]  }
   0x3   :  { %127 = vmatprep.subr.bf16.mxu0 %v138_v0 }
   0x6   :  { %128 = vmatpush3.bf16.msra.mxu0 %v136_v2 }
   0x8   :  { %v19_v4 = vld [vmem:[#allocation2] sm:$0xff]  ;;  %v20_v6 = vld [vmem:[#allocation2 + $0x8] sm:$0xff] }
   0x9   :  { %130 = vmatmul.mubr.msk.bf16.vlgmr.msra.gmra.mrb[0].mxu0 %vm44_vm2, %v137_v3 }
  0xdc   :  { %v82_v5 = vpop.f32.mrb[0].mxu0 }
  0xdd   :  { %v89_v7 = vadd.f32 %v82_v5, %v19_v4  ;;  %v131_v8 = vpop.f32.mrb[1].mxu0 }
  0xde   :  { %v85_v9 = vpop.f32.mrb[2].mxu0 }
  0xdf   :  { %92 = vst.msk [vmem:[#allocation2] sm:$0xff] %vm16_vm0, %v89_v7  ;;  %v90_v10 = vadd.f32 %v85_v9, %v20_v6  ;;  %v132_v11 = vpop.f32.mrb[3].mxu0 }
  0xe1   :  { %93 = vst.msk [vmem:[#allocation2 + $0x8] sm:$0xff] %vm16_vm0, %v90_v10 }
  0xe6   :  { %v97_v12 = vld [vmem:[#allocation2] sm:$0xff] }
  0xe7   :  { %v120_v13 = vpack.c.bf16 %v97_v12, %v97_v12 }
  0xe8   :  { %v98_v14 = vld [vmem:[#allocation2 + $0x8] sm:$0xff] }
  0xe9   :  { %108 = vst.msk [vmem:[%s176_s2] sm:$0xf] %vm107_vm3, %v120_v13  ;;  %v121_v15 = vpack.c.bf16 %v98_v14, %v98_v14 }
  0xeb   :  { %109 = vst.msk [vmem:[%s176_s2 + $0x4] sm:$0xf] %vm107_vm3, %v121_v15 }

// kernel: self_attention_forward.5
= control target key start
LH: loop header
LB: loop body
LE: loop exit
PB: predicated region body
PF: predicated region fallthrough
CT: control target
= control target key end

     0   :  { %v164_v1 = vmov 0.0   ;;  %vm165_vm0 = vmmov 0   ;;  %vm17_vm1 = vcmask 261120   ;;  %s212_s0 = inlined_call_operand.vmem [shape: bf16[16,32], index: 0, kind: input, shape index: {}]   ;;  %s213_s1 = inlined_call_operand.vmem [shape: bf16[32,32], index: 1, kind: input, shape index: {}]   ;;  %s214_s2 = inlined_call_operand.hbm [shape: f32[16,32], index: 2, kind: output, shape index: {}]  }
   0x1   :  { %v137_v0 = vld [vmem:[%s213_s1] sm:$0xff]   ;;  %124 = vmatprep.subr.bf16.mxu0 %v164_v1  ;;  %v138_v2 = vld [vmem:[%s213_s1 + $0x8] sm:$0xff]   ;;  %128 = vmatprep.mubr.msk.bf16.mxu0 %vm165_vm0, %v164_v1  ;;  %18 = vst.msk [vmem:[#allocation2] sm:$0xff] %vm17_vm1, %v164_v1  ;;  %19 = vst.msk [vmem:[#allocation2 + $0x8] sm:$0xff] %vm17_vm1, %v164_v1 }
   0x2   :  { %125 = vmatpush3.bf16.msra.mxu0 %v137_v0 }
   0x3   :  { %126 = vmatprep.subr.bf16.mxu0 %v164_v1 }
   0x4   :  { %7 = vsyncpa [#allocation4], 0  ;;  %v139_v3 = vld [vmem:[%s212_s0] sm:$0xff]   ;;  %s166_s1 = smov [#allocation3]  }
   0x5   :  { %s106_s15 = sshll.u32 %s166_s1, 4  ;;  %s107_s15 = int_to_ptr.vmem [resolvable:$true] %s106_s15 }
   0x6   :  { %127 = vmatpush3.bf16.msra.mxu0 %v138_v2  ;;  %s140_s0 = scalar_lea.vmem %s107_s15, 256  ;;  %p145_p1 = scmp.lt.s32.totalorder %s107_s15, %s107_s15 }
   0x7   :  { %p141_p0 = scmp.ne.s32.totalorder %s107_s15, %s140_s0  ;;  %p146_p2 = scmp.lt.s32.totalorder %s140_s0, %s140_s0 }
   0x8   :  { %v20_v4 = vld [vmem:[#allocation2] sm:$0xff]  ;;  %v21_v6 = vld [vmem:[#allocation2 + $0x8] sm:$0xff] }
   0x9   :  { %129 = vmatmul.mubr.msk.bf16.vlgmr.msra.gmra.mrb[0].mxu0 %vm17_vm1, %v139_v3  ;;  %p147_p3 = por %p146_p2, %p145_p1 }
   0xb   :  { %p148_p4 = pnand %p147_p3, %p141_p0 }
  0xdc   :  { %v83_v5 = vpop.f32.mrb[0].mxu0 }
  0xdd   :  { %v90_v7 = vadd.f32 %v83_v5, %v20_v4  ;;  %v130_v8 = vpop.f32.mrb[1].mxu0 }
  0xde   :  { %v86_v9 = vpop.f32.mrb[2].mxu0 }
  0xdf   :  { %92 = vst.msk [vmem:[#allocation2] sm:$0xff] %vm17_vm1, %v90_v7  ;;  %v91_v10 = vadd.f32 %v86_v9, %v21_v6  ;;  %v131_v11 = vpop.f32.mrb[3].mxu0 }
  0xe1   :  { %93 = vst.msk [vmem:[#allocation2 + $0x8] sm:$0xff] %vm17_vm1, %v91_v10 }
  0xe6   :  { %v97_v12 = vld [vmem:[#allocation2] sm:$0xff] }
  0xe7   :  { %99 = vst.msk [vmem:[#allocation3] sm:$0xff] %vm17_vm1, %v97_v12 }
  0xe8   :  { %v98_v13 = vld [vmem:[#allocation2 + $0x8] sm:$0xff] }
  0xe9   :  { %100 = vst.msk [vmem:[#allocation3 + $0x8] sm:$0xff] %vm17_vm1, %v98_v13 }
  0xea   :  { %151 = shalt.err (!%p148_p4)
}
  0xeb   :  { %s152_s18 = scalar_lea.hbm %s214_s2, 256 }
  0xec   :  { %p153_p5 = scmp.ne.s32.totalorder %s214_s2, %s152_s18  ;;  %p156_p6 = scmp.lt.u32.totalorder %s152_s18, %s214_s2 }
  0xee   :  { %p158_p7 = pnand %p156_p6, %p153_p5 }
  0xf0   :  { %161 = shalt.err (!%p158_p7)
}
  0xf1   :  { %s167_s23 = smov 128   ;;  %s168_s24 = smov 8  }
  0xf2   :  { %112 = dma.vmem_to_hbm [thread:$0]  %s107_s15, 256, %s214_s2, [#allocation4], %s167_s23, %s167_s23, %s168_s24  }
  0xf3   :  { %162 = dma.done.wait [#allocation4], 256  }
  0xf4   :  { %163 = vsyncadd [#allocation4], 4294967040 }
  0xf5   :  { %116 = vsyncpa [#allocation4], 1 }

// kernel: self_attention_forward.4
= control target key start
LH: loop header
LB: loop body
LE: loop exit
PB: predicated region body
PF: predicated region fallthrough
CT: control target
= control target key end

     0   :  { %s919_s12 = smov 0   ;;  %s921_s13 = smov 0   ;;  %s1015_s0 = inlined_call_operand.vmem [shape: bf16[2,2,16,8], index: 0, kind: input, shape index: {}]   ;;  %s1016_s1 = inlined_call_operand.vmem [shape: bf16[4,2,16,8], index: 1, kind: input, shape index: {}]   ;;  %s1017_s2 = inlined_call_operand.vmem [shape: bf16[4,2,16,8], index: 2, kind: input, shape index: {}]   ;;  %s1018_s3 = inlined_call_operand.vmem [shape: bf16[2,2,16,8], index: 3, kind: output, shape index: {}]  }
   0x1   :  { %s923_s14 = smov 0   ;;  %s925_s15 = smov 0  }
   0x2   :  { %s927_s16 = smov 0  }
   0x3 LB: > { %s35_s17 = sadd.s32 1, %s885_s14  ;;  %s39_s18 = sadd.s32 1, %s889_s15  ;;  %s893_s16 = sphi %s927_s16, %s13_s16   ;;  %s889_s15 = sphi %s925_s15, %s1022_s15   ;;  %s885_s14 = sphi %s923_s14, %s1021_s14   ;;  %s881_s13 = sphi %s921_s13, %s1020_s13   ;;  %s877_s12 = sphi %s919_s12, %s1019_s12  }
   0x4   : > { %p37_p0 = scmp.ge.s32.totalorder %s35_s17, 2  ;;  %p754_p1 = scmp.ge.s32.totalorder %s893_s16, 1 }
   0x5   : > { %p226_p2 = scmp.lt.s32.totalorder %s893_s16, 5 }
   0x6   : > { %s1024_s17 = smov (%p37_p0, %s35_s17), 0  ;;  %s1026_s18 = smov (!%p37_p0, %s39_s18), %s889_s15 }
   0x7   : > { %p227_p3 = pnand %p754_p1, %p226_p2  ;;  %p41_p4 = scmp.ge.s32.totalorder %s1026_s18, 2 }
   0x8   : > { %p293_p5 = scmp.lt.s32.totalorder (!%p227_p3), %s881_s13, 1  ;;  %p295_p6 = scmp.lt.s32.totalorder (!%p227_p3), %s877_s12, 1  ;;  %vm358_vm0 = vcmask (!%p227_p3), 64512   ;;  %v895_v0 = vmov (!%p227_p3), 0.0   ;;  %vm896_vm1 = vmmov (!%p227_p3), 0   ;;  %vm353_vm2 = vcmask (!%p227_p3), 7168  }
   0x9   : > { %s1028_s18 = smov (%p41_p4, %s1026_s18), 0  ;;  %230 = sbr.rel (%p227_p3) target bundleno = 834 (0x342), region = 32 }
   0xa   : > { %782 = vmatprep.subr.bf16.mxu0 (!%p227_p3), %v895_v0  ;;  %359 = vst.msk [vmem:[#allocation4] sm:$0xff] (!%p227_p3), %vm358_vm0, %v895_v0  ;;  %360 = vst.msk [vmem:[#allocation4 + $0x8] sm:$0xff] (!%p227_p3), %vm358_vm0, %v895_v0  ;;  %784 = vmatprep.mubr.msk.bf16.mxu0 (!%p227_p3), %vm896_vm1, %v895_v0  ;;  %p307_p7 = scmp.lt.s32.totalorder (!%p227_p3), %s881_s13, 3  ;;  %v897_v4 = vmov (!%p227_p3), -inf   ;;  %v425_v5 = vlaneseq (!%p227_p3)  ;;  %vm435_vm4 = vcmask (!%p227_p3), 130048   ;;  %v898_v15 = vmov (!%p227_p3), 0  }
   0xb   : > { %788 = vmatprep.subr.bf16.mxu1 (!%p227_p3), %v895_v0  ;;  %790 = vmatprep.mubr.msk.bf16.mxu1 (!%p227_p3), %vm896_vm1, %v895_v0  ;;  %354 = vst.msk [vmem:[#allocation2] sm:$0xff] (!%p227_p3), %vm353_vm2, %v897_v4  ;;  %355 = vst.msk [vmem:[#allocation2 + $0x8] sm:$0xff] (!%p227_p3), %vm353_vm2, %v897_v4  ;;  %vm581_vm5 = vcmask (!%p227_p3), 60416  }
   0xc   : > { %356 = vst.msk [vmem:[#allocation3] sm:$0xff] (!%p227_p3), %vm353_vm2, %v895_v0  ;;  %357 = vst.msk [vmem:[#allocation3 + $0x8] sm:$0xff] (!%p227_p3), %vm353_vm2, %v895_v0  ;;  %v426_v6 = vand.u32 (!%p227_p3), 127, %v425_v5  ;;  %838 = vset.pattern.permute.xlu1 (!%p227_p3), %v898_v15  ;;  %839 = vset.pattern.permute.xlu0 (!%p227_p3), %v898_v15 }
   0xe   : > { %vm430_vm3 = vcmp.lt.s32.totalorder (!%p227_p3), %v426_v6, 8 }
  0x10   : > { %s294_s19 = scalar_select %p293_p5, %s881_s13, 1 }
  0x11   : > { %s1030_s12 = smov (!%p295_p6, %s877_s12), 1  ;;  %s1032_s13 = smov (!%p307_p7, %s881_s13), 3  ;;  %v481_v52 = vld [vmem:[#allocation4] sm:$0xff]  ;;  %v482_v54 = vld [vmem:[#allocation4 + $0x8] sm:$0xff] }
  0x12   : > { %s756_s20 = sshll.u32 %s294_s19, 2  ;;  %s755_s21 = sshll.u32 %s1030_s12, 1  ;;  %v433_v16 = vld [vmem:[#allocation2] sm:$0xff]  ;;  %v434_v19 = vld [vmem:[#allocation2 + $0x8] sm:$0xff] }
  0x13   : > { %s956_s22 = sadd.s32 %s756_s20, %s755_s21  ;;  %s759_s27 = sshll.u32 %s1032_s13, 2  ;;  %v466_v40 = vld [vmem:[#allocation3] sm:$0xff]  ;;  %v467_v43 = vld [vmem:[#allocation3 + $0x8] sm:$0xff] }
  0x14   : > { %s757_s23 = sshll.u32 %s956_s22, 2  ;;  %s965_s28 = sadd.s32 %s759_s27, %s755_s21 }
  0x15   : > { %s304_s26 = scalar_lea.vmem %s1015_s0, %s757_s23  ;;  %s760_s29 = sshll.u32 %s965_s28, 2 }
  0x16   : > { %s318_s5 = scalar_lea.vmem %s1016_s1, %s760_s29  ;;  %v841_v3 = vld [vmem:[%s304_s26] sm:$0xff]   ;;  %s332_s8 = scalar_lea.vmem %s1017_s2, %s760_s29 }
  0x17   : > { %v840_v1 = vld [vmem:[%s318_s5] sm:$0xff]   ;;  %s346_s11 = scalar_lea.vmem %s1018_s3, %s757_s23 }
  0x18   : > { %v382_v2 = vsel %vm358_vm0, %v840_v1, 0  ;;  %v842_v24 = vld [vmem:[%s332_s8] sm:$0xff]  }
  0x19   : > { %783 = vmatpush3.bf16.xpose.msra.mxu0 %v382_v2  ;;  %789 = vmatpush3.bf16.msra.mxu1 %v842_v24 }
  0x20   : > { %785 = vmatmul.mubr.msk.bf16.vlgmr.msra.gmra.mrb[0].mxu0 %vm358_vm0, %v841_v3 }
  0xf3   : > { %v418_v7 = vpop.f32.mrb[0].mxu0 }
  0xf4   : > { %v431_v8 = vsel %vm430_vm3, %v418_v7, -1e+30  ;;  %v786_v9 = vpop.f32.mrb[1].mxu0 }
  0xf5   : > { %v421_v10 = vpop.f32.mrb[2].mxu0  ;;  %v436_v11 = vsel %vm435_vm4, %v431_v8, -inf }
  0xf6   : > { %v432_v12 = vsel %vm430_vm3, %v421_v10, -1e+30  ;;  %437 = vmax.xlane.f32.xlu0 %v436_v11  ;;  %v787_v13 = vpop.f32.mrb[3].mxu0 }
  0xf7   : > { %v439_v14 = vsel %vm435_vm4, %v432_v12, -inf }
  0xfa   : > { %440 = vmax.xlane.f32.xlu0 %v439_v14 }
 0x183   : > { %v438_v17 = vpop.xlane.xlu0 %437 }
 0x184   : > { %v442_v18 = vmax.f32 %v433_v16, %v438_v17 }
 0x186   : > { %v444_v20 = vsub.f32 %v433_v16, %v442_v18  ;;  %550 = vst.msk [vmem:[#allocation2] sm:$0xff] %vm353_vm2, %v442_v18  ;;  %452 = vperm.xlu1 %838, %v442_v18  }
 0x187   : > { %v441_v21 = vpop.xlane.xlu0 %440 }
 0x188   : > { %v443_v22 = vmax.f32 %v434_v19, %v441_v21  ;;  %v446_v37 = vmul.f32 1.442695, %v444_v20 }
 0x18a   : > { %v445_v23 = vsub.f32 %v434_v19, %v443_v22  ;;  %551 = vst.msk [vmem:[#allocation2 + $0x8] sm:$0xff] %vm353_vm2, %v443_v22  ;;  %457 = vperm.xlu1 %838, %v443_v22  }
 0x18c   : > { %v448_v36 = vmul.f32 1.442695, %v445_v23 }
 0x205   : > { %v453_v25 = vpop.permute.xlu1 %452 }
 0x206   : > { %v460_v26 = vsub.f32 %v431_v8, %v453_v25 }
 0x208   : > { %v462_v27 = vmul.f32 1.442695, %v460_v26 }
 0x209   : > { %v458_v28 = vpop.permute.xlu1 %457 }
 0x20a   : > { %843 = vpow2.f32 %v462_v27  ;;  %v461_v29 = vsub.f32 %v432_v12, %v458_v28 }
 0x20c   : > { %v464_v30 = vmul.f32 1.442695, %v461_v29 }
 0x20e   : > { %845 = vpow2.f32 %v464_v30 }
 0x20f   : > { %847 = vpow2.f32 %v448_v36 }
 0x210   : > { %849 = vpow2.f32 %v446_v37 }
 0x214   : > { %v844_v31 = vpop.eup %843 }
 0x215   : > { %v470_v32 = vsel %vm435_vm4, %v844_v31, 0.0 }
 0x216   : > { %471 = vadd.xlane.f32.xlu0 %v470_v32 }
 0x218   : > { %v846_v33 = vpop.eup %845 }
 0x219   : > { %v473_v34 = vsel %vm435_vm4, %v846_v33, 0.0  ;;  %v495_v35 = vpack.c.bf16 %v846_v33, %v844_v31  ;;  %v848_v38 = vpop.eup %847 }
 0x21a   : > { %474 = vadd.xlane.f32.xlu1 %v473_v34  ;;  %v850_v39 = vpop.eup %849  ;;  %v469_v45 = vmul.f32 %v848_v38, %v467_v43 }
 0x21b   : > { %791 = vmatmul.mubr.msk.bf16.vlgmr.msra.gmra.mrb[0].mxu1 %vm435_vm4, %v495_v35  ;;  %v468_v41 = vmul.f32 %v850_v39, %v466_v40 }
 0x22b   : > { %490 = vperm.xlu1 %838, %v848_v38  }
 0x22c   : > { %485 = vperm.xlu0 %839, %v850_v39  }
 0x2a3   : > { %v472_v42 = vpop.xlane.xlu0 %471 }
 0x2a4   : > { %v476_v44 = vadd.f32 %v472_v42, %v468_v41 }
 0x2a6   : > { %479 = vst.msk [vmem:[#allocation3] sm:$0xff] %vm353_vm2, %v476_v44 }
 0x2a7   : > { %v475_v46 = vpop.xlane.xlu1 %474 }
 0x2a8   : > { %v477_v47 = vadd.f32 %v475_v46, %v469_v45 }
 0x2aa   : > { %480 = vst.msk [vmem:[#allocation3 + $0x8] sm:$0xff] %vm353_vm2, %v477_v47 }
 0x2ab   : > { %v486_v53 = vpop.permute.xlu0 %485  ;;  %v491_v55 = vpop.permute.xlu1 %490 }
 0x2ac   : > { %v493_v56 = vmul.f32 %v486_v53, %v481_v52  ;;  %v494_v58 = vmul.f32 %v491_v55, %v482_v54 }
 0x2ad   : > { %v555_v48 = vld [vmem:[#allocation3] sm:$0xff] }
 0x2ae   : > { %851 = vrcp.f32 %v555_v48 }
 0x2b1   : > { %v556_v49 = vld [vmem:[#allocation3 + $0x8] sm:$0xff] }
 0x2b2   : > { %853 = vrcp.f32 %v556_v49 }
 0x2b8   : > { %v852_v50 = vpop.eup %851 }
 0x2b9   : > { %563 = vperm.xlu0 %839, %v852_v50  }
 0x2bc   : > { %v854_v51 = vpop.eup %853 }
 0x2bd   : > { %568 = vperm.xlu0 %839, %v854_v51  }
 0x2ee   : > { %v539_v57 = vpop.f32.mrb[0].mxu1 }
 0x2ef   : > { %v546_v59 = vadd.f32 %v539_v57, %v493_v56  ;;  %v792_v60 = vpop.f32.mrb[1].mxu1 }
 0x2f0   : > { %v542_v61 = vpop.f32.mrb[2].mxu1 }
 0x2f1   : > { %548 = vst.msk [vmem:[#allocation4] sm:$0xff] %vm358_vm0, %v546_v59  ;;  %v547_v62 = vadd.f32 %v542_v61, %v494_v58  ;;  %v793_v63 = vpop.f32.mrb[3].mxu1 }
 0x2f3   : > { %549 = vst.msk [vmem:[#allocation4 + $0x8] sm:$0xff] %vm358_vm0, %v547_v62 }
 0x2f8   : > { %v559_v0 = vld [vmem:[#allocation4] sm:$0xff] }
 0x2fa   : > { %v560_v4 = vld [vmem:[#allocation4 + $0x8] sm:$0xff] }
 0x338   : > { %v564_v1 = vpop.permute.xlu0 %563 }
 0x339   : > { %v571_v2 = vmul.f32 %v564_v1, %v559_v0 }
 0x33b   : > { %v776_v3 = vpack.c.bf16 %v571_v2, %v571_v2 }
 0x33c   : > { %v569_v5 = vpop.permute.xlu0 %568 }
 0x33d   : > { %582 = vst.msk [vmem:[%s346_s11] sm:$0xf] %vm581_vm5, %v776_v3  ;;  %v572_v6 = vmul.f32 %v569_v5, %v560_v4 }
 0x33f   : > { %v777_v7 = vpack.c.bf16 %v572_v6, %v572_v6 }
 0x341   : > { %583 = vst.msk [vmem:[%s346_s11 + $0x4] sm:$0xf] %vm581_vm5, %v777_v7 }
 0x342 PF: > { %s13_s16 = sadd.s32 1, %s893_s16   ;;  %s1019_s12 = smov %s885_s14 }
 0x343   : > { %p10_p8 = scmp.ge.s32.totalorder %s13_s16, 6   ;;  %s1020_s13 = smov %s889_s15 }
 0x344   : > { %s1021_s14 = smov %s1024_s17  ;;  %s1022_s15 = smov %s1028_s18 }
 0x345   :  { %12 = sbr.rel (!%p10_p8) target bundleno = 3 (0x3), region = 76 }

</bundles_post_ra>
